<compile_context>
chip_gen: v7x
topology: tpu7x:2x2x1
jax: 0.10.0
libtpu: 0.0.40
codegen_flags: <defaults>
</compile_context>

<pallas_src>
import functools

import jax
import jax.numpy as jnp
from jax.experimental import pallas as pl
from jax.experimental.pallas import tpu as pltpu


# ----------------------------- kernel ---------------------------------------


def autoencoder_kernel(x_ref,
                       w1_ref, b1_ref, w2_ref, b2_ref,   # encoder params
                       w3_ref, b3_ref, w4_ref, b4_ref,   # decoder params
                       z_ref, y_ref, *, compute_dtype):
    x = x_ref[...].astype(compute_dtype)

    # ---- encoder: Linear -> ReLU -> Linear (last ReLU stripped) ----
    h1 = jnp.dot(x, w1_ref[...].astype(compute_dtype),
                 preferred_element_type=jnp.float32) + b1_ref[...]
    h1 = jnp.maximum(h1, 0.0)
    z = jnp.dot(h1.astype(compute_dtype), w2_ref[...].astype(compute_dtype),
                preferred_element_type=jnp.float32) + b2_ref[...]
    z_ref[...] = z.astype(z_ref.dtype)

    # ---- decoder: Linear -> ReLU -> Linear (last ReLU stripped) ----
    h2 = jnp.dot(z.astype(compute_dtype), w3_ref[...].astype(compute_dtype),
                 preferred_element_type=jnp.float32) + b3_ref[...]
    h2 = jnp.maximum(h2, 0.0)
    y = jnp.dot(h2.astype(compute_dtype), w4_ref[...].astype(compute_dtype),
                preferred_element_type=jnp.float32) + b4_ref[...]
    y_ref[...] = y.astype(y_ref.dtype)


# ----------------------------- wrapper ---------------------------------------


def _round_up(x, m):
    return ((x + m - 1) // m) * m


def _pick_batch_tile(batch, d0, d1, d2, budget_bytes):
    """Largest multiple-of-8 batch tile (<=1024) fitting a conservative VMEM budget."""
    # f32 bytes per row of tile: x (2x dbuf) + y (2x dbuf) + z (2x dbuf) + h1 + h2
    per_row = 4 * (2 * d0 + 2 * d0 + 2 * d2 + d1 + d1)
    # weights/biases double-buffered by the pipeline
    weights = 4 * 2 * (d0 * d1 + d1 * d2 + d2 * d1 + d1 * d0 + 2 * d1 + d2 + d0)
    avail = max(budget_bytes - weights, per_row * 8)
    tb = (avail // per_row) // 8 * 8
    tb = max(8, min(1024, int(tb)))
    tb = min(tb, _round_up(batch, 8))
    return tb


def autoencoder_forward(x, params, *, batch_tile=None, compute_dtype=jnp.float32):
    """x: [B, nb_cells] float32. params: dict of weights (in, out) / biases (1, out)."""
    B, nb_cells = x.shape
    hidden = params["w1"].shape[1]
    latent = params["w2"].shape[1]

    # --- lane-pad feature dims to multiples of 128 (full-width MXU / stores) ---
    d0 = _round_up(nb_cells, 128)
    d1 = _round_up(hidden, 128)
    d2 = _round_up(latent, 128)

    # --- batch tile: multiple of 8 sublanes, sized for VMEM (v7x-safe budget) ---
    if batch_tile is None:
        tb = _pick_batch_tile(B, d0, d1, d2, budget_bytes=40 << 20)
    else:
        tb = max(8, _round_up(int(batch_tile), 8))
        tb = min(tb, _round_up(B, 8))
    B_pad = _round_up(B, tb)
    grid = B_pad // tb

    # --- zero-pad inputs / params (zeros keep valid-slice numerics exact) ---
    def pad2(a, r, c):
        return jnp.pad(a, ((0, r - a.shape[0]), (0, c - a.shape[1])))

    xp = jnp.pad(x, ((0, B_pad - B), (0, d0 - nb_cells)))
    w1p, b1p = pad2(params["w1"], d0, d1), pad2(params["b1"], 1, d1)
    w2p, b2p = pad2(params["w2"], d1, d2), pad2(params["b2"], 1, d2)
    w3p, b3p = pad2(params["w3"], d2, d1), pad2(params["b3"], 1, d1)
    w4p, b4p = pad2(params["w4"], d1, d0), pad2(params["b4"], 1, d0)

    w_spec = lambda shape: pl.BlockSpec(shape, lambda i: (0, 0))
    in_specs = [
        pl.BlockSpec((tb, d0), lambda i: (i, 0)),             # x tile
        w_spec(w1p.shape), w_spec(b1p.shape),
        w_spec(w2p.shape), w_spec(b2p.shape),
        w_spec(w3p.shape), w_spec(b3p.shape),
        w_spec(w4p.shape), w_spec(b4p.shape),
    ]
    out_specs = (
        pl.BlockSpec((tb, d2), lambda i: (i, 0)),             # z tile
        pl.BlockSpec((tb, d0), lambda i: (i, 0)),             # y tile
    )
    out_shape = (
        jax.ShapeDtypeStruct((B_pad, d2), x.dtype),
        jax.ShapeDtypeStruct((B_pad, d0), x.dtype),
    )

    # --- cost estimate: 4 matmuls per row + x/z/y + params traffic ---
    flops = 2 * B_pad * (d0 * d1 + d1 * d2 + d2 * d1 + d1 * d0)
    param_bytes = 4 * (d0 * d1 + d1 * d2 + d2 * d1 + d1 * d0 + 2 * d1 + d2 + d0)
    bytes_accessed = 4 * B_pad * (2 * d0 + d2) + param_bytes
    cost = pl.CostEstimate(flops=int(flops), transcendentals=0,
                           bytes_accessed=int(bytes_accessed))

    # --- scoped-VMEM limit derived from actual footprint (clamped, v7x-safe) ---
    tile_bytes = 4 * tb * (2 * d0 + 2 * d0 + 2 * d2 + 2 * d1)
    vmem_needed = 2 * param_bytes + tile_bytes + (4 << 20)
    vmem_limit = int(min(max(vmem_needed, 32 << 20), 64 << 20))

    z_pad, y_pad = pl.pallas_call(
        functools.partial(autoencoder_kernel, compute_dtype=compute_dtype),
        out_shape=out_shape,
        grid_spec=pltpu.PrefetchScalarGridSpec(
            num_scalar_prefetch=0,
            grid=(grid,),
            in_specs=in_specs,
            out_specs=out_specs,
        ),
        compiler_params=pltpu.CompilerParams(
            dimension_semantics=("parallel",),
            vmem_limit_bytes=vmem_limit,
        ),
        cost_estimate=cost,
    )(xp, w1p, b1p, w2p, b2p, w3p, b3p, w4p, b4p)

    # strip batch / lane padding
    return z_pad[:B, :latent], y_pad[:B, :nb_cells]


# ----------------------------- params / reference ----------------------------


def init_params(key, nb_cells, nb_units):
    """Deterministic synthetic init. Encoder: nb_cells -> nb_units[...].
    Decoder: mirror. Weights stored (in, out); biases stored (1, out)."""
    enc_units = [nb_cells] + list(nb_units)
    dec_units = enc_units[::-1]
    dims = list(zip(enc_units[:-1], enc_units[1:])) + list(zip(dec_units[:-1], dec_units[1:]))
    keys = jax.random.split(key, 2 * len(dims))
    params = {}
    for idx, (d_in, d_out) in enumerate(dims):
        kw, kb = keys[2 * idx], keys[2 * idx + 1]
        scale = 1.0 / jnp.sqrt(jnp.float32(d_in))
        params[f"w{idx + 1}"] = jax.random.uniform(kw, (d_in, d_out), jnp.float32, -scale, scale)
        params[f"b{idx + 1}"] = jax.random.uniform(kb, (1, d_out), jnp.float32, -scale, scale)
    return params


def reference_forward(x, p):
    h1 = jnp.maximum(x @ p["w1"] + p["b1"], 0.0)
    z = h1 @ p["w2"] + p["b2"]
    h2 = jnp.maximum(z @ p["w3"] + p["b3"], 0.0)
    y = h2 @ p["w4"] + p["b4"]
    return z, y


# TODO(synk): training utilities (MSELoss/AdamW/CosineAnnealingLR, trn/tst) are
# host-side PyTorch machinery, not part of the forward pass — not translated.


if __name__ == "__main__":
    # Small, forward-consistent shapes: nb_cells=64 input features, nb_units=[32, 16]
    nb_cells = 64
    nb_units = [32, 16]

    key = jax.random.PRNGKey(0)
    kx, kp, kx2 = jax.random.split(key, 3)
    params = init_params(kp, nb_cells, nb_units)

    # Test 1: tiny batch (single grid step), exact f32 semantics.
    batch = 8
    x = jax.random.normal(kx, (batch, nb_cells), dtype=jnp.float32)
    z, y = autoencoder_forward(x, params)
    z, y = jax.block_until_ready((z, y))
    z_ref, y_ref = reference_forward(x, params)
    assert z.shape == (batch, nb_units[-1]) and y.shape == (batch, nb_cells)
    assert jnp.allclose(z, z_ref, atol=1e-5, rtol=1e-5)
    assert jnp.allclose(y, y_ref, atol=1e-5, rtol=1e-5)

    # Test 2: ragged batch + explicit tile -> multi-step pipelined grid
    #         (exercises batch padding, lane padding, and megacore sharding).
    batch2 = 300
    x2 = jax.random.normal(kx2, (batch2, nb_cells), dtype=jnp.float32)
    z2, y2 = autoencoder_forward(x2, params, batch_tile=128)
    z2, y2 = jax.block_until_ready((z2, y2))
    z2_ref, y2_ref = reference_forward(x2, params)
    assert z2.shape == (batch2, nb_units[-1]) and y2.shape == (batch2, nb_cells)
    assert jnp.allclose(z2, z2_ref, atol=1e-5, rtol=1e-5)
    assert jnp.allclose(y2, y2_ref, atol=1e-5, rtol=1e-5)

    print("KERNEL_OK")
</pallas_src>

<mosaic_0001>
module attributes {stable_mosaic.version = 11 : i64} {
  func.func @autoencoder_kernel(%arg0: i32, %arg1: memref<8x128xf32, #tpu.memory_space<vmem>>, %arg2: memref<128x128xf32, #tpu.memory_space<vmem>>, %arg3: memref<1x128xf32, #tpu.memory_space<vmem>>, %arg4: memref<128x128xf32, #tpu.memory_space<vmem>>, %arg5: memref<1x128xf32, #tpu.memory_space<vmem>>, %arg6: memref<128x128xf32, #tpu.memory_space<vmem>>, %arg7: memref<1x128xf32, #tpu.memory_space<vmem>>, %arg8: memref<128x128xf32, #tpu.memory_space<vmem>>, %arg9: memref<1x128xf32, #tpu.memory_space<vmem>>, %arg10: memref<8x128xf32, #tpu.memory_space<vmem>>, %arg11: memref<8x128xf32, #tpu.memory_space<vmem>>) attributes {dimension_semantics = [#tpu.dimension_semantics<parallel>], iteration_bounds = array<i64: 1>, scalar_prefetch = 0 : i64, scratch_operands = 0 : i64, tpu.core_type = #tpu.core_type<tc>, window_params = [{transform_indices = @transform_0, window_bounds = array<i64: 8, 128>}, {pipeline_mode = #tpu.pipeline_mode<synchronous>, transform_indices = @transform_1, window_bounds = array<i64: 128, 128>}, {pipeline_mode = #tpu.pipeline_mode<synchronous>, transform_indices = @transform_2, window_bounds = array<i64: 1, 128>}, {pipeline_mode = #tpu.pipeline_mode<synchronous>, transform_indices = @transform_3, window_bounds = array<i64: 128, 128>}, {pipeline_mode = #tpu.pipeline_mode<synchronous>, transform_indices = @transform_4, window_bounds = array<i64: 1, 128>}, {pipeline_mode = #tpu.pipeline_mode<synchronous>, transform_indices = @transform_5, window_bounds = array<i64: 128, 128>}, {pipeline_mode = #tpu.pipeline_mode<synchronous>, transform_indices = @transform_6, window_bounds = array<i64: 1, 128>}, {pipeline_mode = #tpu.pipeline_mode<synchronous>, transform_indices = @transform_7, window_bounds = array<i64: 128, 128>}, {pipeline_mode = #tpu.pipeline_mode<synchronous>, transform_indices = @transform_8, window_bounds = array<i64: 1, 128>}, {transform_indices = @transform_9, window_bounds = array<i64: 8, 128>}, {transform_indices = @transform_10, window_bounds = array<i64: 8, 128>}]} {
    %c0 = arith.constant 0 : index
    %c0_0 = arith.constant 0 : index
    %0 = vector.load %arg1[%c0, %c0_0] : memref<8x128xf32, #tpu.memory_space<vmem>>, vector<8x128xf32>
    %c0_1 = arith.constant 0 : index
    %c0_2 = arith.constant 0 : index
    %1 = vector.load %arg2[%c0_1, %c0_2] : memref<128x128xf32, #tpu.memory_space<vmem>>, vector<128x128xf32>
    %cst = arith.constant dense<0.000000e+00> : vector<8x128xf32>
    %2 = tpu.matmul %0, %1, %cst {dimension_numbers = #tpu.dot_dimension_numbers<[1], [0], [0], [1], [0, 0, 1, 1], [], []>} : vector<8x128xf32>, vector<128x128xf32>, vector<8x128xf32> -> vector<8x128xf32>
    %c0_3 = arith.constant 0 : index
    %c0_4 = arith.constant 0 : index
    %3 = vector.load %arg3[%c0_3, %c0_4] : memref<1x128xf32, #tpu.memory_space<vmem>>, vector<1x128xf32>
    %4 = vector.broadcast %3 : vector<1x128xf32> to vector<8x128xf32>
    %5 = arith.addf %2, %4 : vector<8x128xf32>
    %cst_5 = arith.constant 0.000000e+00 : f32
    %6 = vector.broadcast %cst_5 : f32 to vector<8x128xf32>
    %7 = arith.maximumf %5, %6 : vector<8x128xf32>
    %c0_6 = arith.constant 0 : index
    %c0_7 = arith.constant 0 : index
    %8 = vector.load %arg4[%c0_6, %c0_7] : memref<128x128xf32, #tpu.memory_space<vmem>>, vector<128x128xf32>
    %cst_8 = arith.constant dense<0.000000e+00> : vector<8x128xf32>
    %9 = tpu.matmul %7, %8, %cst_8 {dimension_numbers = #tpu.dot_dimension_numbers<[1], [0], [0], [1], [0, 0, 1, 1], [], []>} : vector<8x128xf32>, vector<128x128xf32>, vector<8x128xf32> -> vector<8x128xf32>
    %c0_9 = arith.constant 0 : index
    %c0_10 = arith.constant 0 : index
    %10 = vector.load %arg5[%c0_9, %c0_10] : memref<1x128xf32, #tpu.memory_space<vmem>>, vector<1x128xf32>
    %11 = vector.broadcast %10 : vector<1x128xf32> to vector<8x128xf32>
    %12 = arith.addf %9, %11 : vector<8x128xf32>
    %c0_11 = arith.constant 0 : index
    %c0_12 = arith.constant 0 : index
    %13 = vector.load %arg10[%c0_11, %c0_12] : memref<8x128xf32, #tpu.memory_space<vmem>>, vector<8x128xf32>
    tpu.vector_store %arg10[%c0_11, %c0_12], %12 {strides = array<i32>} : memref<8x128xf32, #tpu.memory_space<vmem>>, vector<8x128xf32>,
    %c0_13 = arith.constant 0 : index
    %c0_14 = arith.constant 0 : index
    %14 = vector.load %arg6[%c0_13, %c0_14] : memref<128x128xf32, #tpu.memory_space<vmem>>, vector<128x128xf32>
    %cst_15 = arith.constant dense<0.000000e+00> : vector<8x128xf32>
    %15 = tpu.matmul %12, %14, %cst_15 {dimension_numbers = #tpu.dot_dimension_numbers<[1], [0], [0], [1], [0, 0, 1, 1], [], []>} : vector<8x128xf32>, vector<128x128xf32>, vector<8x128xf32> -> vector<8x128xf32>
    %c0_16 = arith.constant 0 : index
    %c0_17 = arith.constant 0 : index
    %16 = vector.load %arg7[%c0_16, %c0_17] : memref<1x128xf32, #tpu.memory_space<vmem>>, vector<1x128xf32>
    %17 = vector.broadcast %16 : vector<1x128xf32> to vector<8x128xf32>
    %18 = arith.addf %15, %17 : vector<8x128xf32>
    %cst_18 = arith.constant 0.000000e+00 : f32
    %19 = vector.broadcast %cst_18 : f32 to vector<8x128xf32>
    %20 = arith.maximumf %18, %19 : vector<8x128xf32>
    %c0_19 = arith.constant 0 : index
    %c0_20 = arith.constant 0 : index
    %21 = vector.load %arg8[%c0_19, %c0_20] : memref<128x128xf32, #tpu.memory_space<vmem>>, vector<128x128xf32>
    %cst_21 = arith.constant dense<0.000000e+00> : vector<8x128xf32>
    %22 = tpu.matmul %20, %21, %cst_21 {dimension_numbers = #tpu.dot_dimension_numbers<[1], [0], [0], [1], [0, 0, 1, 1], [], []>} : vector<8x128xf32>, vector<128x128xf32>, vector<8x128xf32> -> vector<8x128xf32>
    %c0_22 = arith.constant 0 : index
    %c0_23 = arith.constant 0 : index
    %23 = vector.load %arg9[%c0_22, %c0_23] : memref<1x128xf32, #tpu.memory_space<vmem>>, vector<1x128xf32>
    %24 = vector.broadcast %23 : vector<1x128xf32> to vector<8x128xf32>
    %25 = arith.addf %22, %24 : vector<8x128xf32>
    %c0_24 = arith.constant 0 : index
    %c0_25 = arith.constant 0 : index
    %26 = vector.load %arg11[%c0_24, %c0_25] : memref<8x128xf32, #tpu.memory_space<vmem>>, vector<8x128xf32>
    tpu.vector_store %arg11[%c0_24, %c0_25], %25 {strides = array<i32>} : memref<8x128xf32, #tpu.memory_space<vmem>>, vector<8x128xf32>,
    return
  }
  func.func @transform_0(%arg0: i32) -> (i32, i32) {
    %c0_i32 = arith.constant 0 : i32
    %c0_i32_0 = arith.constant 0 : i32
    return %arg0, %c0_i32 : i32, i32
  }
  func.func @transform_1(%arg0: i32) -> (i32, i32) {
    %c0_i32 = arith.constant 0 : i32
    %c0_i32_0 = arith.constant 0 : i32
    %c0_i32_1 = arith.constant 0 : i32
    return %c0_i32, %c0_i32_0 : i32, i32
  }
  func.func @transform_2(%arg0: i32) -> (i32, i32) {
    %c0_i32 = arith.constant 0 : i32
    %c0_i32_0 = arith.constant 0 : i32
    %c0_i32_1 = arith.constant 0 : i32
    return %c0_i32, %c0_i32_0 : i32, i32
  }
  func.func @transform_3(%arg0: i32) -> (i32, i32) {
    %c0_i32 = arith.constant 0 : i32
    %c0_i32_0 = arith.constant 0 : i32
    %c0_i32_1 = arith.constant 0 : i32
    return %c0_i32, %c0_i32_0 : i32, i32
  }
  func.func @transform_4(%arg0: i32) -> (i32, i32) {
    %c0_i32 = arith.constant 0 : i32
    %c0_i32_0 = arith.constant 0 : i32
    %c0_i32_1 = arith.constant 0 : i32
    return %c0_i32, %c0_i32_0 : i32, i32
  }
  func.func @transform_5(%arg0: i32) -> (i32, i32) {
    %c0_i32 = arith.constant 0 : i32
    %c0_i32_0 = arith.constant 0 : i32
    %c0_i32_1 = arith.constant 0 : i32
    return %c0_i32, %c0_i32_0 : i32, i32
  }
  func.func @transform_6(%arg0: i32) -> (i32, i32) {
    %c0_i32 = arith.constant 0 : i32
    %c0_i32_0 = arith.constant 0 : i32
    %c0_i32_1 = arith.constant 0 : i32
    return %c0_i32, %c0_i32_0 : i32, i32
  }
  func.func @transform_7(%arg0: i32) -> (i32, i32) {
    %c0_i32 = arith.constant 0 : i32
    %c0_i32_0 = arith.constant 0 : i32
    %c0_i32_1 = arith.constant 0 : i32
    return %c0_i32, %c0_i32_0 : i32, i32
  }
  func.func @transform_8(%arg0: i32) -> (i32, i32) {
    %c0_i32 = arith.constant 0 : i32
    %c0_i32_0 = arith.constant 0 : i32
    %c0_i32_1 = arith.constant 0 : i32
    return %c0_i32, %c0_i32_0 : i32, i32
  }
  func.func @transform_9(%arg0: i32) -> (i32, i32) {
    %c0_i32 = arith.constant 0 : i32
    %c0_i32_0 = arith.constant 0 : i32
    return %arg0, %c0_i32 : i32, i32
  }
  func.func @transform_10(%arg0: i32) -> (i32, i32) {
    %c0_i32 = arith.constant 0 : i32
    %c0_i32_0 = arith.constant 0 : i32
    return %arg0, %c0_i32 : i32, i32
  }
}

</mosaic_0001>

<bundles_post_ra>
// kernel: tpu_custom_call.1
= control target key start
LH: loop header
LB: loop body
LE: loop exit
PB: predicated region body
PF: predicated region fallthrough
CT: control target
= control target key end

     0   :  { %16 = vsyncpa [#allocation3], 0  ;;  %s1209_s0 = inlined_call_operand.hbm [shape: f32[8,128], index: 0, kind: input, shape index: {}]   ;;  %s1210_s1 = inlined_call_operand.hbm [shape: f32[128,128], index: 1, kind: input, shape index: {}]   ;;  %s1211_s2 = inlined_call_operand.vmem [shape: f32[1,128], index: 2, kind: input, shape index: {}]   ;;  %s1212_s3 = inlined_call_operand.hbm [shape: f32[128,128], index: 3, kind: input, shape index: {}]   ;;  %s1213_s4 = inlined_call_operand.vmem [shape: f32[1,128], index: 4, kind: input, shape index: {}]   ;;  %s1214_s5 = inlined_call_operand.hbm [shape: f32[128,128], index: 5, kind: input, shape index: {}]   ;;  %s1215_s6 = inlined_call_operand.vmem [shape: f32[1,128], index: 6, kind: input, shape index: {}]   ;;  %s1216_s7 = inlined_call_operand.hbm [shape: f32[128,128], index: 7, kind: input, shape index: {}]   ;;  %s1217_s8 = inlined_call_operand.vmem [shape: f32[1,128], index: 8, kind: input, shape index: {}]   ;;  %s1218_s9 = inlined_call_operand.hbm [shape: f32[8,128], index: 9, kind: output, shape index: {0}]   ;;  %s1219_s10 = inlined_call_operand.hbm [shape: f32[8,128], index: 10, kind: output, shape index: {1}]  }
   0x1   :  { %17 = vsyncpa [#allocation6], 0 }
   0x2   :  { %18 = vsyncpa [#allocation9], 0 }
   0x3   :  { %19 = vsyncpa [#allocation4], 0 }
   0x4   :  { %20 = vsyncpa [#allocation13], 0  ;;  %s994_s13 = smov [#allocation5]   ;;  %s830_s17 = scalar_lea.hbm %s1210_s1, 2048 }
   0x5   :  { %s36_s14 = sshll.u32 %s994_s13, 4  ;;  %p831_p0 = scmp.ne.s32.totalorder %s1210_s1, %s830_s17  ;;  %s37_s14 = int_to_ptr.vmem [resolvable:$true] %s36_s14 }
   0x6   :  { %p834_p1 = scmp.lt.u32.totalorder %s830_s17, %s1210_s1 }
   0x8   :  { %p836_p2 = pnand %p834_p1, %p831_p0 }
   0xa   :  { %839 = shalt.err (!%p836_p2)
}
   0xb   :  { %s840_s22 = scalar_lea.vmem %s37_s14, 2048  ;;  %p845_p4 = scmp.lt.s32.totalorder %s37_s14, %s37_s14 }
   0xc   :  { %p841_p3 = scmp.ne.s32.totalorder %s37_s14, %s840_s22  ;;  %p846_p5 = scmp.lt.s32.totalorder %s840_s22, %s840_s22 }
   0xe   :  { %p847_p6 = por %p846_p5, %p845_p4 }
  0x10   :  { %p848_p7 = pnand %p847_p6, %p841_p3 }
  0x12   :  { %851 = shalt.err (!%p848_p7)
}
  0x13   :  { %s995_s23 = smov 128   ;;  %s996_s24 = smov 8  }
  0x14   :  { %42 = dma.hbm_to_vmem [thread:$0]  %s1210_s1, 2048, %s37_s14, [#allocation6], %s995_s23, %s995_s23, %s996_s24  }
  0x15   :  { %s997_s27 = smov [#allocation8]   ;;  %s998_s29 = smov [#allocation2]  }
  0x16   :  { %s64_s28 = sshll.u32 %s997_s27, 4  ;;  %s27_s30 = sshll.u32 %s998_s29, 4  ;;  %s65_s28 = int_to_ptr.vmem [resolvable:$true] %s64_s28  ;;  %s28_s30 = int_to_ptr.vmem [resolvable:$true] %s27_s30 }
  0x17   :  { %s852_s13 = scalar_lea.hbm %s1214_s5, 2048 }
  0x18   :  { %p853_p8 = scmp.ne.s32.totalorder %s1214_s5, %s852_s13  ;;  %p856_p9 = scmp.lt.u32.totalorder %s852_s13, %s1214_s5 }
  0x1a   :  { %p858_p10 = pnand %p856_p9, %p853_p8 }
  0x1c   :  { %861 = shalt.err (!%p858_p10)
}
  0x1d   :  { %s862_s1 = scalar_lea.vmem %s65_s28, 2048  ;;  %p867_p12 = scmp.lt.s32.totalorder %s65_s28, %s65_s28 }
  0x1e   :  { %p863_p11 = scmp.ne.s32.totalorder %s65_s28, %s862_s1  ;;  %p868_p13 = scmp.lt.s32.totalorder %s862_s1, %s862_s1 }
  0x20   :  { %p869_p0 = por %p868_p13, %p867_p12 }
  0x22   :  { %p870_p1 = pnand %p869_p0, %p863_p11 }
  0x24   :  { %873 = shalt.err (!%p870_p1)
}
  0x25   :  { %70 = dma.hbm_to_vmem [thread:$0]  %s1214_s5, 2048, %s65_s28, [#allocation9], %s995_s23, %s995_s23, %s996_s24  }
  0x26   :  { %s874_s22 = scalar_lea.hbm %s1209_s0, 128 }
  0x27   :  { %p875_p2 = scmp.ne.s32.totalorder %s1209_s0, %s874_s22  ;;  %p878_p3 = scmp.lt.u32.totalorder %s874_s22, %s1209_s0 }
  0x29   :  { %p880_p4 = pnand %p878_p3, %p875_p2 }
  0x2b   :  { %883 = shalt.err (!%p880_p4)
}
  0x2c   :  { %s884_s11 = scalar_lea.vmem %s28_s30, 128  ;;  %p889_p6 = scmp.lt.s32.totalorder %s28_s30, %s28_s30 }
  0x2d   :  { %p885_p5 = scmp.ne.s32.totalorder %s28_s30, %s884_s11  ;;  %p890_p7 = scmp.lt.s32.totalorder %s884_s11, %s884_s11 }
  0x2f   :  { %p891_p8 = por %p890_p7, %p889_p6 }
  0x31   :  { %p892_p9 = pnand %p891_p8, %p885_p5 }
  0x33   :  { %895 = shalt.err (!%p892_p9)
}
  0x34   :  { %30 = dma.hbm_to_vmem [thread:$0]  %s1209_s0, 128, %s28_s30, [#allocation3]  }
  0x35   :  { %s999_s12 = smov [#allocation7]   ;;  %s1000_s15 = smov [#allocation10]  }
  0x36   :  { %s50_s13 = sshll.u32 %s999_s12, 4  ;;  %s78_s16 = sshll.u32 %s1000_s15, 4  ;;  %s51_s13 = int_to_ptr.vmem [resolvable:$true] %s50_s13  ;;  %s79_s16 = int_to_ptr.vmem [resolvable:$true] %s78_s16 }
  0x37   :  { %s896_s1 = scalar_lea.hbm %s1212_s3, 2048 }
  0x38   :  { %p897_p10 = scmp.ne.s32.totalorder %s1212_s3, %s896_s1  ;;  %p900_p11 = scmp.lt.u32.totalorder %s896_s1, %s1212_s3 }
  0x3a   :  { %p902_p12 = pnand %p900_p11, %p897_p10 }
  0x3c   :  { %905 = shalt.err (!%p902_p12)
}
  0x3d   :  { %s906_s0 = scalar_lea.vmem %s51_s13, 2048  ;;  %p911_p0 = scmp.lt.s32.totalorder %s51_s13, %s51_s13 }
  0x3e   :  { %p907_p13 = scmp.ne.s32.totalorder %s51_s13, %s906_s0  ;;  %p912_p1 = scmp.lt.s32.totalorder %s906_s0, %s906_s0 }
  0x40   :  { %p913_p2 = por %p912_p1, %p911_p0 }
  0x42   :  { %p914_p3 = pnand %p913_p2, %p907_p13 }
  0x44   :  { %917 = shalt.err (!%p914_p3)
}
  0x45   :  { %56 = dma.hbm_to_vmem [thread:$0]  %s1212_s3, 2048, %s51_s13, [#allocation6], %s995_s23, %s995_s23, %s996_s24  }
  0x46   :  { %s918_s27 = scalar_lea.hbm %s1216_s7, 2048 }
  0x47   :  { %p919_p4 = scmp.ne.s32.totalorder %s1216_s7, %s918_s27  ;;  %p922_p5 = scmp.lt.u32.totalorder %s918_s27, %s1216_s7 }
  0x49   :  { %p924_p6 = pnand %p922_p5, %p919_p4 }
  0x4b   :  { %927 = shalt.err (!%p924_p6)
}
  0x4c   :  { %s928_s12 = scalar_lea.vmem %s79_s16, 2048  ;;  %p933_p8 = scmp.lt.s32.totalorder %s79_s16, %s79_s16 }
  0x4d   :  { %p929_p7 = scmp.ne.s32.totalorder %s79_s16, %s928_s12  ;;  %p934_p9 = scmp.lt.s32.totalorder %s928_s12, %s928_s12 }
  0x4f   :  { %p935_p10 = por %p934_p9, %p933_p8 }
  0x51   :  { %p936_p11 = pnand %p935_p10, %p929_p7 }
  0x53   :  { %939 = shalt.err (!%p936_p11)
}
  0x54   :  { %84 = dma.hbm_to_vmem [thread:$0]  %s1216_s7, 2048, %s79_s16, [#allocation9], %s995_s23, %s995_s23, %s996_s24  }
  0x55   :  { %984 = dma.done.wait [#allocation3], 128  }
  0x56   :  { %985 = vsyncadd [#allocation3], 4294967168 }
  0x57   :  { %986 = dma.done.wait [#allocation6], 4096  }
  0x58   :  { %987 = vsyncadd [#allocation6], 4294963200 }
  0x59   :  { %988 = dma.done.wait [#allocation9], 4096  }
  0x5a   :  { %989 = vsyncadd [#allocation9], 4294963200  ;;  %v1001_v0 = vmov 0.0|0.0   ;;  %vm1002_vm0 = vmmov 0   ;;  %v1003_v1 = vmov 0.0   ;;  %v103_v2 = vld [vmem:[#allocation5] sm:$0xff] }
  0x5b   :  { %722 = vmatprep.subr.bf16.mxu0 %v1001_v0  ;;  %614 = vmatprep.mubr.msk.f32.mxu0 %vm1002_vm0, %v1003_v1  ;;  %v104_v3 = vld [vmem:[#allocation5 + $0x8] sm:$0xff]  ;;  %v105_v4 = vld [vmem:[#allocation5 + $0x10] sm:$0xff]  ;;  %v106_v6 = vld [vmem:[#allocation5 + $0x18] sm:$0xff]  ;;  %s1004_s17 = smov [#allocation11]  }
  0x5c   :  { %746 = vmatprep.subr.bf16.mxu1 %v1001_v0  ;;  %649 = vmatprep.mubr.msk.f32.mxu1 %vm1002_vm0, %v1003_v1  ;;  %v723_v5 = vpack.c.bf16 %v104_v3, %v103_v2  ;;  %v726_v7 = vpack.c.bf16 %v106_v6, %v105_v4  ;;  %v107_v8 = vld [vmem:[#allocation5 + $0x20] sm:$0xff]  ;;  %v108_v9 = vld [vmem:[#allocation5 + $0x28] sm:$0xff]  ;;  %v199_v12 = vld [vmem:[#allocation7 + $0x10] sm:$0xff] }
  0x5d   :  { %v197_v10 = vld [vmem:[#allocation7] sm:$0xff]  ;;  %v198_v11 = vld [vmem:[#allocation7 + $0x8] sm:$0xff]  ;;  %v200_v13 = vld [vmem:[#allocation7 + $0x18] sm:$0xff]  ;;  %v729_v14 = vpack.c.bf16 %v108_v9, %v107_v8 }
  0x5e   :  { %724 = vmatpush3.bf16.msra.mxu0 %v723_v5  ;;  %v747_v15 = vpack.c.bf16 %v198_v11, %v197_v10  ;;  %v109_v16 = vld [vmem:[#allocation5 + $0x30] sm:$0xff]  ;;  %v110_v17 = vld [vmem:[#allocation5 + $0x38] sm:$0xff]  ;;  %v750_v18 = vpack.c.bf16 %v200_v13, %v199_v12  ;;  %v201_v19 = vld [vmem:[#allocation7 + $0x20] sm:$0xff] }
  0x5f   :  { %725 = vmatprep.subr.bf16.mxu0 %v1001_v0  ;;  %v202_v20 = vld [vmem:[#allocation7 + $0x28] sm:$0xff]  ;;  %v732_v21 = vpack.c.bf16 %v110_v17, %v109_v16  ;;  %v111_v22 = vld [vmem:[#allocation5 + $0x40] sm:$0xff]  ;;  %v203_v25 = vld [vmem:[#allocation7 + $0x30] sm:$0xff] }
  0x60   :  { %748 = vmatpush3.bf16.msra.mxu1 %v747_v15  ;;  %v112_v23 = vld [vmem:[#allocation5 + $0x48] sm:$0xff]  ;;  %v753_v24 = vpack.c.bf16 %v202_v20, %v201_v19  ;;  %v204_v26 = vld [vmem:[#allocation7 + $0x38] sm:$0xff]  ;;  %v113_v28 = vld [vmem:[#allocation5 + $0x50] sm:$0xff] }
  0x61   :  { %749 = vmatprep.subr.bf16.mxu1 %v1001_v0  ;;  %v735_v27 = vpack.c.bf16 %v112_v23, %v111_v22  ;;  %v114_v29 = vld [vmem:[#allocation5 + $0x58] sm:$0xff]  ;;  %v756_v30 = vpack.c.bf16 %v204_v26, %v203_v25  ;;  %v205_v31 = vld [vmem:[#allocation7 + $0x40] sm:$0xff]  ;;  %v206_v32 = vld [vmem:[#allocation7 + $0x48] sm:$0xff] }
  0x62   :  { %727 = vmatpush3.bf16.msra.mxu0 %v726_v7  ;;  %v738_v33 = vpack.c.bf16 %v114_v29, %v113_v28  ;;  %v115_v34 = vld [vmem:[#allocation5 + $0x60] sm:$0xff]  ;;  %v116_v35 = vld [vmem:[#allocation5 + $0x68] sm:$0xff]  ;;  %v759_v36 = vpack.c.bf16 %v206_v32, %v205_v31  ;;  %v207_v37 = vld [vmem:[#allocation7 + $0x50] sm:$0xff] }
  0x63   :  { %728 = vmatprep.subr.bf16.mxu0 %v1001_v0  ;;  %v208_v38 = vld [vmem:[#allocation7 + $0x58] sm:$0xff]  ;;  %v741_v39 = vpack.c.bf16 %v116_v35, %v115_v34  ;;  %v117_v40 = vld [vmem:[#allocation5 + $0x70] sm:$0xff]  ;;  %v209_v43 = vld [vmem:[#allocation7 + $0x60] sm:$0xff] }
  0x64   :  { %751 = vmatpush3.bf16.msra.mxu1 %v750_v18  ;;  %v118_v41 = vld [vmem:[#allocation5 + $0x78] sm:$0xff]  ;;  %v762_v42 = vpack.c.bf16 %v208_v38, %v207_v37  ;;  %v210_v44 = vld [vmem:[#allocation7 + $0x68] sm:$0xff]  ;;  %v211_v48 = vld [vmem:[#allocation7 + $0x70] sm:$0xff] }
  0x65   :  { %752 = vmatprep.subr.bf16.mxu1 %v1001_v0  ;;  %v744_v45 = vpack.c.bf16 %v118_v41, %v117_v40  ;;  %v765_v46 = vpack.c.bf16 %v210_v44, %v209_v43  ;;  %v102_v47 = vld [vmem:[#allocation2] sm:$0xff]  ;;  %v291_v51 = vld [vmem:[#allocation8] sm:$0xff]  ;;  %v292_v52 = vld [vmem:[#allocation8 + $0x8] sm:$0xff] }
  0x66   :  { %730 = vmatpush3.bf16.msra.mxu0 %v729_v14  ;;  %v212_v49 = vld [vmem:[#allocation7 + $0x78] sm:$0xff]  ;;  %v293_v53 = vld [vmem:[#allocation8 + $0x10] sm:$0xff]  ;;  %v771_v54 = vpack.c.bf16 %v292_v52, %v291_v51  ;;  %v295_v57 = vld [vmem:[#allocation8 + $0x20] sm:$0xff] }
  0x67   :  { %731 = vmatprep.subr.bf16.mxu0 %v1001_v0  ;;  %v768_v50 = vpack.c.bf16 %v212_v49, %v211_v48  ;;  %v294_v55 = vld [vmem:[#allocation8 + $0x18] sm:$0xff]  ;;  %v296_v58 = vld [vmem:[#allocation8 + $0x28] sm:$0xff]  ;;  %v297_v60 = vld [vmem:[#allocation8 + $0x30] sm:$0xff] }
  0x68   :  { %754 = vmatpush3.bf16.msra.mxu1 %v753_v24  ;;  %v774_v56 = vpack.c.bf16 %v294_v55, %v293_v53  ;;  %v777_v59 = vpack.c.bf16 %v296_v58, %v295_v57  ;;  %v298_v61 = vld [vmem:[#allocation8 + $0x38] sm:$0xff]  ;;  %v299_v63 = vld [vmem:[#allocation8 + $0x40] sm:$0xff]  ;;  %v300_v2 = vld [vmem:[#allocation8 + $0x48] sm:$0xff] }
  0x69   :  { %755 = vmatprep.subr.bf16.mxu1 %v1001_v0  ;;  %v780_v62 = vpack.c.bf16 %v298_v61, %v297_v60  ;;  %v783_v3 = vpack.c.bf16 %v300_v2, %v299_v63  ;;  %v301_v4 = vld [vmem:[#allocation8 + $0x50] sm:$0xff]  ;;  %v302_v5 = vld [vmem:[#allocation8 + $0x58] sm:$0xff]  ;;  %v303_v7 = vld [vmem:[#allocation8 + $0x60] sm:$0xff] }
  0x6a   :  { %733 = vmatpush3.bf16.msra.mxu0 %v732_v21  ;;  %v786_v6 = vpack.c.bf16 %v302_v5, %v301_v4  ;;  %v304_v8 = vld [vmem:[#allocation8 + $0x68] sm:$0xff]  ;;  %v510_v10 = vld [vmem:[%s1211_s2] ss:$0 sm:$0xff]  ;;  %v305_v15 = vld [vmem:[#allocation8 + $0x70] sm:$0xff] }
  0x6b   :  { %734 = vmatprep.subr.bf16.mxu0 %v1001_v0  ;;  %v789_v9 = vpack.c.bf16 %v304_v8, %v303_v7  ;;  %v306_v16 = vld [vmem:[#allocation8 + $0x78] sm:$0xff]  ;;  %v385_v18 = vld [vmem:[#allocation10] sm:$0xff]  ;;  %v386_v19 = vld [vmem:[#allocation10 + $0x8] sm:$0xff] }
  0x6c   :  { %757 = vmatpush3.bf16.msra.mxu1 %v756_v30  ;;  %v792_v17 = vpack.c.bf16 %v306_v16, %v305_v15  ;;  %v387_v20 = vld [vmem:[#allocation10 + $0x10] sm:$0xff]  ;;  %v795_v21 = vpack.c.bf16 %v386_v19, %v385_v18  ;;  %v388_v22 = vld [vmem:[#allocation10 + $0x18] sm:$0xff]  ;;  %v389_v24 = vld [vmem:[#allocation10 + $0x20] sm:$0xff] }
  0x6d   :  { %758 = vmatprep.subr.bf16.mxu1 %v1001_v0  ;;  %v798_v23 = vpack.c.bf16 %v388_v22, %v387_v20  ;;  %v390_v25 = vld [vmem:[#allocation10 + $0x28] sm:$0xff]  ;;  %v393_v29 = vld [vmem:[#allocation10 + $0x40] sm:$0xff]  ;;  %v395_v32 = vld [vmem:[#allocation10 + $0x50] sm:$0xff] }
  0x6e   :  { %736 = vmatpush3.bf16.msra.mxu0 %v735_v27  ;;  %v801_v26 = vpack.c.bf16 %v390_v25, %v389_v24  ;;  %v392_v27 = vld [vmem:[#allocation10 + $0x38] sm:$0xff]  ;;  %v394_v30 = vld [vmem:[#allocation10 + $0x48] sm:$0xff]  ;;  %v397_v35 = vld [vmem:[#allocation10 + $0x60] sm:$0xff] }
  0x6f   :  { %737 = vmatprep.subr.bf16.mxu0 %v1001_v0  ;;  %v807_v31 = vpack.c.bf16 %v394_v30, %v393_v29  ;;  %v511_v38 = vld [vmem:[%s1213_s4] ss:$0 sm:$0xff]  ;;  %s485_s4 = sshll.u32 %s1004_s17, 4  ;;  %s486_s4 = int_to_ptr.vmem [resolvable:$true] %s485_s4 }
  0x70   :  { %760 = vmatpush3.bf16.msra.mxu1 %v759_v36  ;;  %v398_v36 = vld [vmem:[#allocation10 + $0x68] sm:$0xff]  ;;  %v400_v43 = vld [vmem:[#allocation10 + $0x78] sm:$0xff]  ;;  %s940_s18 = scalar_lea.vmem %s486_s4, 128  ;;  %p945_p13 = scmp.lt.s32.totalorder %s486_s4, %s486_s4 }
  0x71   :  { %761 = vmatprep.subr.bf16.mxu1 %v1001_v0  ;;  %v813_v37 = vpack.c.bf16 %v398_v36, %v397_v35  ;;  %p941_p12 = scmp.ne.s32.totalorder %s486_s4, %s940_s18  ;;  %p946_p0 = scmp.lt.s32.totalorder %s940_s18, %s940_s18 }
  0x72   :  { %739 = vmatpush3.bf16.msra.mxu0 %v738_v33  ;;  %v396_v33 = vld [vmem:[#allocation10 + $0x58] sm:$0xff] }
  0x73   :  { %740 = vmatprep.subr.bf16.mxu0 %v1001_v0  ;;  %v810_v34 = vpack.c.bf16 %v396_v33, %v395_v32  ;;  %p947_p1 = por %p946_p0, %p945_p13 }
  0x74   :  { %763 = vmatpush3.bf16.msra.mxu1 %v762_v42  ;;  %v399_v42 = vld [vmem:[#allocation10 + $0x70] sm:$0xff] }
  0x75   :  { %764 = vmatprep.subr.bf16.mxu1 %v1001_v0  ;;  %v816_v44 = vpack.c.bf16 %v400_v43, %v399_v42  ;;  %p948_p2 = pnand %p947_p1, %p941_p12 }
  0x76   :  { %742 = vmatpush3.bf16.msra.mxu0 %v741_v39 }
  0x77   :  { %743 = vmatprep.subr.bf16.mxu0 %v1001_v0 }
  0x78   :  { %766 = vmatpush3.bf16.msra.mxu1 %v765_v46 }
  0x79   :  { %767 = vmatprep.subr.bf16.mxu1 %v1001_v0 }
  0x7a   :  { %745 = vmatpush3.bf16.msra.mxu0 %v744_v45  ;;  %v512_v45 = vld [vmem:[%s1215_s6] ss:$0 sm:$0xff] }
  0x7b   :  { %770 = vmatprep.subr.bf16.mxu0 %v1001_v0 }
  0x7c   :  { %769 = vmatpush3.bf16.msra.mxu1 %v768_v50 }
  0x7d   :  { %615 = vmatmul.mubr.f32.vlgmr.msra.gmra.mrb[0].mxu0 %v102_v47  ;;  %794 = vmatprep.subr.bf16.mxu1 %v1001_v0 }
  0x7e   :  { %684 = vmatprep.mubr.msk.f32.mxu0 %vm1002_vm0, %v1003_v1  ;;  %772 = vmatpush3.bf16.msra.mxu0 %v771_v54 }
  0x7f   :  { %773 = vmatprep.subr.bf16.mxu0 %v1001_v0 }
  0x82   :  { %775 = vmatpush3.bf16.msra.mxu0 %v774_v56 }
  0x83   :  { %776 = vmatprep.subr.bf16.mxu0 %v1001_v0 }
  0x86   :  { %778 = vmatpush3.bf16.msra.mxu0 %v777_v59 }
  0x87   :  { %779 = vmatprep.subr.bf16.mxu0 %v1001_v0 }
  0x8a   :  { %781 = vmatpush3.bf16.msra.mxu0 %v780_v62 }
  0x8b   :  { %782 = vmatprep.subr.bf16.mxu0 %v1001_v0 }
  0x8e   :  { %784 = vmatpush3.bf16.msra.mxu0 %v783_v3 }
  0x8f   :  { %785 = vmatprep.subr.bf16.mxu0 %v1001_v0 }
  0x92   :  { %787 = vmatpush3.bf16.msra.mxu0 %v786_v6 }
  0x93   :  { %788 = vmatprep.subr.bf16.mxu0 %v1001_v0 }
  0x96   :  { %790 = vmatpush3.bf16.msra.mxu0 %v789_v9 }
  0x97   :  { %791 = vmatprep.subr.bf16.mxu0 %v1001_v0 }
  0x9a   :  { %793 = vmatpush3.bf16.msra.mxu0 %v792_v17 }
 0x150   :  { %v192_v11 = vpop.f32.mrb[0].mxu0 }
 0x151   :  { %v193_v12 = vadd.f32 %v510_v10, %v192_v11  ;;  %v616_v13 = vpop.f32.mrb[1].mxu0 }
 0x153   :  { %v196_v14 = vmax.f32 %v193_v12, 0.0 }
 0x155   :  { %650 = vmatmul.mubr.f32.vlgmr.msra.gmra.mrb[0].mxu1 %v196_v14 }
 0x156   :  { %719 = vmatprep.mubr.msk.f32.mxu1 %vm1002_vm0, %v1003_v1  ;;  %796 = vmatpush3.bf16.msra.mxu1 %v795_v21  ;;  %v391_v1 = vld [vmem:[#allocation10 + $0x30] sm:$0xff] }
 0x157   :  { %797 = vmatprep.subr.bf16.mxu1 %v1001_v0  ;;  %v804_v28 = vpack.c.bf16 %v392_v27, %v391_v1 }
 0x15a   :  { %799 = vmatpush3.bf16.msra.mxu1 %v798_v23 }
 0x15b   :  { %800 = vmatprep.subr.bf16.mxu1 %v1001_v0 }
 0x15e   :  { %802 = vmatpush3.bf16.msra.mxu1 %v801_v26 }
 0x15f   :  { %803 = vmatprep.subr.bf16.mxu1 %v1001_v0 }
 0x162   :  { %805 = vmatpush3.bf16.msra.mxu1 %v804_v28 }
 0x163   :  { %806 = vmatprep.subr.bf16.mxu1 %v1001_v0 }
 0x166   :  { %808 = vmatpush3.bf16.msra.mxu1 %v807_v31 }
 0x167   :  { %809 = vmatprep.subr.bf16.mxu1 %v1001_v0 }
 0x16a   :  { %811 = vmatpush3.bf16.msra.mxu1 %v810_v34 }
 0x16b   :  { %812 = vmatprep.subr.bf16.mxu1 %v1001_v0 }
 0x16e   :  { %814 = vmatpush3.bf16.msra.mxu1 %v813_v37 }
 0x16f   :  { %815 = vmatprep.subr.bf16.mxu1 %v1001_v0 }
 0x172   :  { %817 = vmatpush3.bf16.msra.mxu1 %v816_v44 }
 0x228   :  { %v286_v39 = vpop.f32.mrb[0].mxu1 }
 0x229   :  { %v287_v40 = vadd.f32 %v511_v38, %v286_v39  ;;  %v651_v41 = vpop.f32.mrb[1].mxu1 }
 0x22b   :  { %290 = vst [vmem:[#allocation11] sm:$0xff] %v287_v40  ;;  %685 = vmatmul.mubr.f32.vlgmr.msra.gmra.mrb[2].mxu0 %v287_v40 }
 0x2fe   :  { %v380_v46 = vpop.f32.mrb[2].mxu0 }
 0x2ff   :  { %v381_v47 = vadd.f32 %v512_v45, %v380_v46  ;;  %v686_v0 = vpop.f32.mrb[3].mxu0 }
 0x301   :  { %v384_v48 = vmax.f32 %v381_v47, 0.0 }
 0x303   :  { %720 = vmatmul.mubr.f32.vlgmr.msra.gmra.mrb[2].mxu1 %v384_v48 }
 0x304   :  { %951 = shalt.err (!%p948_p2)
}
 0x305   :  { %s952_s19 = scalar_lea.hbm %s1218_s9, 128 }
 0x306   :  { %p953_p3 = scmp.ne.s32.totalorder %s1218_s9, %s952_s19  ;;  %p956_p4 = scmp.lt.u32.totalorder %s952_s19, %s1218_s9 }
 0x308   :  { %p958_p5 = pnand %p956_p4, %p953_p3 }
 0x30a   :  { %961 = shalt.err (!%p958_p5)
}
 0x30b   :  { %488 = dma.vmem_to_hbm [thread:$0]  %s486_s4, 128, %s1218_s9, [#allocation4]   ;;  %v513_v49 = vld [vmem:[%s1217_s8] ss:$0 sm:$0xff] }
 0x30c   :  { %s1005_s27 = smov [#allocation12]  }
 0x30d   :  { %s495_s29 = sshll.u32 %s1005_s27, 4  ;;  %s496_s29 = int_to_ptr.vmem [resolvable:$true] %s495_s29 }
 0x30e   :  { %s962_s11 = scalar_lea.vmem %s496_s29, 128  ;;  %p967_p7 = scmp.lt.s32.totalorder %s496_s29, %s496_s29 }
 0x30f   :  { %p963_p6 = scmp.ne.s32.totalorder %s496_s29, %s962_s11  ;;  %p968_p8 = scmp.lt.s32.totalorder %s962_s11, %s962_s11 }
 0x311   :  { %p969_p9 = por %p968_p8, %p967_p7 }
 0x313   :  { %p970_p10 = pnand %p969_p9, %p963_p6 }
 0x3d6   :  { %v474_v50 = vpop.f32.mrb[2].mxu1 }
 0x3d7   :  { %v475_v51 = vadd.f32 %v513_v49, %v474_v50  ;;  %v721_v52 = vpop.f32.mrb[3].mxu1 }
 0x3d9   :  { %478 = vst [vmem:[#allocation12] sm:$0xff] %v475_v51 }
 0x3da   :  { %973 = shalt.err (!%p970_p10)
}
 0x3db   :  { %s974_s28 = scalar_lea.hbm %s1219_s10, 128 }
 0x3dc   :  { %p975_p11 = scmp.ne.s32.totalorder %s1219_s10, %s974_s28  ;;  %p978_p12 = scmp.lt.u32.totalorder %s974_s28, %s1219_s10 }
 0x3de   :  { %p980_p13 = pnand %p978_p12, %p975_p11 }
 0x3e0   :  { %983 = shalt.err (!%p980_p13)
}
 0x3e1   :  { %498 = dma.vmem_to_hbm [thread:$0]  %s496_s29, 128, %s1219_s10, [#allocation13]  }
 0x3e2   :  { %990 = dma.done.wait [#allocation4], 128  }
 0x3e3   :  { %991 = vsyncadd [#allocation4], 4294967168 }
 0x3e4   :  { %992 = dma.done.wait [#allocation13], 128  }
 0x3e5   :  { %993 = vsyncadd [#allocation13], 4294967168 }
 0x3e6   :  { %505 = vsyncpa [#allocation3], 1 }
 0x3e7   :  { %506 = vsyncpa [#allocation6], 1 }
 0x3e8   :  { %507 = vsyncpa [#allocation9], 1 }
 0x3e9   :  { %508 = vsyncpa [#allocation4], 1 }
 0x3ea   :  { %509 = vsyncpa [#allocation13], 1 }

</bundles_post_ra>
